<compile_context>
chip_gen: v7x
topology: tpu7x:2x2x1
jax: 0.10.0
libtpu: 0.0.40
codegen_flags: <defaults>
</compile_context>

<pallas_src>
import math
import numpy as np
import jax
import jax.numpy as jnp
from jax.experimental import pallas as pl
from jax.experimental.pallas import tpu as pltpu

SEQ = 50                      # sequence length of the PyTorch module
D_MODEL = 32                  # embedding dim
VOCAB = 39                    # vocab size
GROUPS = 4                    # positions packed per 128-lane output row (4*32=128)
SEQ_PAD = 52                  # SEQ rounded up to a multiple of GROUPS
ROWS = SEQ_PAD // GROUPS      # 13 packed rows per sequence
LANES = GROUPS * D_MODEL      # 128 lanes per packed row
K_TOK = GROUPS * VOCAB        # 156 block-diagonal embedding-table rows
K_TOTAL = K_TOK + ROWS        # + 13 packed-pe rows = 169
K_PAD = 176                   # contraction dim rounded up to a multiple of 8


def _build_pe() -> np.ndarray:
    """Deterministic positional-encoding table matching the PyTorch loop."""
    pe = np.empty((SEQ, D_MODEL), dtype=np.float32)
    for pos in range(SEQ):
        for i in range(D_MODEL):
            v = pos / (10000.0 ** (i / D_MODEL))
            pe[pos, i] = math.sin(v) if i % 2 == 0 else math.cos(v)
    return pe


def _build_packed_rhs(table, pe):
    """(K_PAD, 128) f32 RHS: block-diagonal embedding table + packed pe rows."""
    rhs = jnp.zeros((K_PAD, LANES), jnp.float32)
    table = table.astype(jnp.float32)
    for g in range(GROUPS):
        rhs = rhs.at[g * VOCAB:(g + 1) * VOCAB,
                     g * D_MODEL:(g + 1) * D_MODEL].set(table)
    pe_pad = jnp.zeros((SEQ_PAD, D_MODEL), jnp.float32).at[:SEQ].set(
        pe.astype(jnp.float32))
    rhs = rhs.at[K_TOK:K_TOK + ROWS, :].set(pe_pad.reshape(ROWS, LANES))
    return rhs


def _pack_hot_columns(x):
    """(B, SEQ) token ids -> (B, ROWS, GROUPS+1) int32 'hot column' indices."""
    B = x.shape[0]
    x_pad = jnp.zeros((B, SEQ_PAD), jnp.int32).at[:, :SEQ].set(x.astype(jnp.int32))
    # group g of packed row r is position 4*r+g; its table row is g*VOCAB + id
    tok_cols = x_pad.reshape(B, ROWS, GROUPS) + (
        jnp.arange(GROUPS, dtype=jnp.int32) * VOCAB)
    # one extra column per row selects the packed-pe row K_TOK + r
    pe_cols = jnp.broadcast_to(
        (K_TOK + jnp.arange(ROWS, dtype=jnp.int32))[None, :, None], (B, ROWS, 1))
    return jnp.concatenate([tok_cols, pe_cols], axis=-1)


def _posemb_kernel(cols_ref, rhs_ref, out_ref):
    # cols_ref: (TB, 13, 5)  int32  hot-column ids (4 token cols + 1 pe col)
    # rhs_ref:  (176, 128)   f32    block-diag table + packed pe (constant block)
    # out_ref:  (TB, 13, 128) f32   4 packed positions per lane-dense row
    cols = cols_ref[...]
    k_iota = jax.lax.broadcasted_iota(jnp.int32, (1, 1, K_PAD), 2)
    hot = None
    for g in range(GROUPS + 1):                       # unrolled: 5 lane compares
        m = cols[:, :, g:g + 1] == k_iota             # (TB, 13, K_PAD) bool
        hot = m if hot is None else jnp.logical_or(hot, m)
    # Exact 0/1 one-hot; the f32 matmul just selects one table row + one pe row
    # per 32-lane slot, so the result is bit-exact vs. take()+add.
    lhs = hot.astype(jnp.float32)
    out_ref[...] = jax.lax.dot_general(
        lhs, rhs_ref[...],
        dimension_numbers=(((2,), (0,)), ((), ())),
        preferred_element_type=jnp.float32,
    )


def _default_block_b(B):
    if B <= 16:
        return B                      # single step: overhead-bound regime anyway
    half = pl.cdiv(B, 2)              # >=2 steps so both v7x TensorCores get work
    half = ((half + 7) // 8) * 8      # keep it a tidy multiple of 8
    return min(128, half)             # ~7 MiB/step at 128: safe for v7x 64 MiB VMEM


def position_embedding(x, table, pe, *, block_b=None, use_pallas=None):
    """x: (B, 50) int ids -> (B, 50, 32) f32 = table[x] + pe."""
    B = x.shape[0]
    if use_pallas is None:
        use_pallas = B >= 8           # small-batch bypass: launch costs dominate
    if not use_pallas:
        return jnp.take(table, x, axis=0) + pe[None, :, :]

    if block_b is None:
        block_b = _default_block_b(B)
    block_b = min(block_b, B)

    cols = _pack_hot_columns(x)                       # (B, 13, 5)  int32
    rhs = _build_packed_rhs(table, pe)                # (176, 128)  f32

    grid = (pl.cdiv(B, block_b),)
    cost = pl.CostEstimate(
        flops=2 * B * ROWS * K_PAD * LANES,
        transcendentals=0,
        bytes_accessed=4 * (cols.size + rhs.size + B * ROWS * LANES),
    )
    packed = pl.pallas_call(
        _posemb_kernel,
        out_shape=jax.ShapeDtypeStruct((B, ROWS, LANES), jnp.float32),
        grid=grid,
        in_specs=[
            # batch-tiled hot-column ids
            pl.BlockSpec((block_b, ROWS, GROUPS + 1), lambda i: (i, 0, 0)),
            # RHS: full-array block, constant index_map -> fetched once
            pl.BlockSpec((K_PAD, LANES), lambda i: (0, 0)),
        ],
        out_specs=pl.BlockSpec((block_b, ROWS, LANES), lambda i: (i, 0, 0)),
        compiler_params=pltpu.CompilerParams(
            dimension_semantics=("parallel",),        # megacore-shard batch on v7x
            vmem_limit_bytes=32 * 1024 * 1024,        # allow >128-row tiles on v5e
        ),
        cost_estimate=cost,
    )(cols, rhs)

    # Layout plumbing back to the module's (B, 50, 32) output.
    return packed.reshape(B, SEQ_PAD, D_MODEL)[:, :SEQ, :]


if __name__ == "__main__":
    key = jax.random.PRNGKey(0)
    k_emb, k_x1, k_x2 = jax.random.split(key, 3)

    # nn.Embedding(39, 32) with weight.data.normal_(0, 0.1)
    embed_weight = (0.1 * jax.random.normal(k_emb, (VOCAB, D_MODEL))).astype(jnp.float32)
    pe = jnp.asarray(_build_pe())

    def reference(xx):
        return jnp.take(embed_weight, xx, axis=0) + pe[None, :, :]

    # 1) Small case (B=2), forced through the Pallas kernel (single grid step).
    B = 2
    x = jax.random.randint(k_x1, (B, SEQ), 0, VOCAB, dtype=jnp.int32)
    out = jax.block_until_ready(
        position_embedding(x, embed_weight, pe, use_pallas=True))
    assert out.shape == (B, SEQ, D_MODEL)
    np.testing.assert_allclose(np.asarray(out), np.asarray(reference(x)),
                               rtol=1e-5, atol=1e-5)

    # 2) Larger case (B=48): auto block_b=24 -> 2 pipelined "parallel" grid steps.
    B2 = 48
    x2 = jax.random.randint(k_x2, (B2, SEQ), 0, VOCAB, dtype=jnp.int32)
    out2 = jax.block_until_ready(position_embedding(x2, embed_weight, pe))
    np.testing.assert_allclose(np.asarray(out2), np.asarray(reference(x2)),
                               rtol=1e-5, atol=1e-5)

    # 3) Tiny-batch default path takes the XLA bypass (no pallas_call).
    out3 = jax.block_until_ready(position_embedding(x, embed_weight, pe))
    np.testing.assert_allclose(np.asarray(out3), np.asarray(reference(x)),
                               rtol=1e-5, atol=1e-5)

    print("KERNEL_OK")
</pallas_src>

<mosaic_0001>
module attributes {stable_mosaic.version = 11 : i64} {
  func.func @_posemb_kernel(%arg0: i32, %arg1: memref<2x13x5xi32, #tpu.memory_space<vmem>>, %arg2: memref<176x128xf32, #tpu.memory_space<vmem>>, %arg3: memref<2x13x128xf32, #tpu.memory_space<vmem>>) attributes {dimension_semantics = [#tpu.dimension_semantics<parallel>], iteration_bounds = array<i64: 1>, scalar_prefetch = 0 : i64, scratch_operands = 0 : i64, tpu.core_type = #tpu.core_type<tc>, window_params = [{transform_indices = @transform_0, window_bounds = array<i64: 2, 13, 5>}, {pipeline_mode = #tpu.pipeline_mode<synchronous>, transform_indices = @transform_1, window_bounds = array<i64: 176, 128>}, {transform_indices = @transform_2, window_bounds = array<i64: 2, 13, 128>}]} {
    %c0 = arith.constant 0 : index
    %c0_0 = arith.constant 0 : index
    %c0_1 = arith.constant 0 : index
    %0 = vector.load %arg1[%c0, %c0_0, %c0_1] : memref<2x13x5xi32, #tpu.memory_space<vmem>>, vector<2x13x5xi32>
    %1 = tpu.iota {dimensions = array<i32: 2>} : vector<1x1x176xi32>
    %2 = vector.extract_strided_slice %0 {offsets = [0, 0, 0], sizes = [2, 13, 1], strides = [1, 1, 1]} : vector<2x13x5xi32> to vector<2x13x1xi32>
    %3 = vector.broadcast %2 : vector<2x13x1xi32> to vector<2x13x176xi32>
    %4 = vector.broadcast %1 : vector<1x1x176xi32> to vector<2x13x176xi32>
    %5 = arith.cmpi eq, %3, %4 : vector<2x13x176xi32>
    %6 = vector.extract_strided_slice %0 {offsets = [0, 0, 1], sizes = [2, 13, 1], strides = [1, 1, 1]} : vector<2x13x5xi32> to vector<2x13x1xi32>
    %7 = vector.broadcast %6 : vector<2x13x1xi32> to vector<2x13x176xi32>
    %8 = vector.broadcast %1 : vector<1x1x176xi32> to vector<2x13x176xi32>
    %9 = arith.cmpi eq, %7, %8 : vector<2x13x176xi32>
    %10 = arith.ori %5, %9 : vector<2x13x176xi1>
    %11 = vector.extract_strided_slice %0 {offsets = [0, 0, 2], sizes = [2, 13, 1], strides = [1, 1, 1]} : vector<2x13x5xi32> to vector<2x13x1xi32>
    %12 = vector.broadcast %11 : vector<2x13x1xi32> to vector<2x13x176xi32>
    %13 = vector.broadcast %1 : vector<1x1x176xi32> to vector<2x13x176xi32>
    %14 = arith.cmpi eq, %12, %13 : vector<2x13x176xi32>
    %15 = arith.ori %10, %14 : vector<2x13x176xi1>
    %16 = vector.extract_strided_slice %0 {offsets = [0, 0, 3], sizes = [2, 13, 1], strides = [1, 1, 1]} : vector<2x13x5xi32> to vector<2x13x1xi32>
    %17 = vector.broadcast %16 : vector<2x13x1xi32> to vector<2x13x176xi32>
    %18 = vector.broadcast %1 : vector<1x1x176xi32> to vector<2x13x176xi32>
    %19 = arith.cmpi eq, %17, %18 : vector<2x13x176xi32>
    %20 = arith.ori %15, %19 : vector<2x13x176xi1>
    %21 = vector.extract_strided_slice %0 {offsets = [0, 0, 4], sizes = [2, 13, 1], strides = [1, 1, 1]} : vector<2x13x5xi32> to vector<2x13x1xi32>
    %22 = vector.broadcast %21 : vector<2x13x1xi32> to vector<2x13x176xi32>
    %23 = vector.broadcast %1 : vector<1x1x176xi32> to vector<2x13x176xi32>
    %24 = arith.cmpi eq, %22, %23 : vector<2x13x176xi32>
    %25 = arith.ori %20, %24 : vector<2x13x176xi1>
    %26 = arith.extui %25 : vector<2x13x176xi1> to vector<2x13x176xi32>
    %27 = arith.sitofp %26 : vector<2x13x176xi32> to vector<2x13x176xf32>
    %c0_2 = arith.constant 0 : index
    %c0_3 = arith.constant 0 : index
    %28 = vector.load %arg2[%c0_2, %c0_3] : memref<176x128xf32, #tpu.memory_space<vmem>>, vector<176x128xf32>
    %cst = arith.constant dense<0.000000e+00> : vector<2x13x128xf32>
    %29 = tpu.matmul %27, %28, %cst {dimension_numbers = #tpu.dot_dimension_numbers<[2], [0], [0, 1], [1], [0, 0, 0, 1, 1, 1], [], []>} : vector<2x13x176xf32>, vector<176x128xf32>, vector<2x13x128xf32> -> vector<2x13x128xf32>
    %c0_4 = arith.constant 0 : index
    %c0_5 = arith.constant 0 : index
    %c0_6 = arith.constant 0 : index
    %30 = vector.load %arg3[%c0_4, %c0_5, %c0_6] : memref<2x13x128xf32, #tpu.memory_space<vmem>>, vector<2x13x128xf32>
    tpu.vector_store %arg3[%c0_4, %c0_5, %c0_6], %29 {strides = array<i32>} : memref<2x13x128xf32, #tpu.memory_space<vmem>>, vector<2x13x128xf32>,
    return
  }
  func.func @transform_0(%arg0: i32) -> (i32, i32, i32) {
    %c0_i32 = arith.constant 0 : i32
    %c0_i32_0 = arith.constant 0 : i32
    %c0_i32_1 = arith.constant 0 : i32
    return %arg0, %c0_i32, %c0_i32_0 : i32, i32, i32
  }
  func.func @transform_1(%arg0: i32) -> (i32, i32) {
    %c0_i32 = arith.constant 0 : i32
    %c0_i32_0 = arith.constant 0 : i32
    %c0_i32_1 = arith.constant 0 : i32
    return %c0_i32, %c0_i32_0 : i32, i32
  }
  func.func @transform_2(%arg0: i32) -> (i32, i32, i32) {
    %c0_i32 = arith.constant 0 : i32
    %c0_i32_0 = arith.constant 0 : i32
    %c0_i32_1 = arith.constant 0 : i32
    return %arg0, %c0_i32, %c0_i32_0 : i32, i32, i32
  }
}

</mosaic_0001>

<bundles_post_ra>
// kernel: tpu_custom_call.1
= control target key start
LH: loop header
LB: loop body
LE: loop exit
PB: predicated region body
PF: predicated region fallthrough
CT: control target
= control target key end

     0   :  { %7 = vsyncpa [#allocation3], 0  ;;  %s1196_s9 = smov [#allocation2]   ;;  %s1537_s0 = inlined_call_operand.vmem [shape: s32[2,13,5], index: 0, kind: input, shape index: {}]   ;;  %s1538_s1 = inlined_call_operand.hbm [shape: f32[176,128], index: 1, kind: input, shape index: {}]   ;;  %s1539_s2 = inlined_call_operand.vmem [shape: f32[2,13,128], index: 2, kind: output, shape index: {}]  }
   0x1   :  { %s15_s10 = sshll.u32 %s1196_s9, 4  ;;  %s1172_s13 = scalar_lea.hbm %s1538_s1, 2816  ;;  %s16_s10 = int_to_ptr.vmem [resolvable:$true] %s15_s10 }
   0x2   :  { %p1173_p0 = scmp.ne.s32.totalorder %s1538_s1, %s1172_s13  ;;  %p1176_p1 = scmp.lt.u32.totalorder %s1172_s13, %s1538_s1 }
   0x4   :  { %p1178_p2 = pnand %p1176_p1, %p1173_p0 }
   0x6   :  { %1181 = shalt.err (!%p1178_p2)
}
   0x7   :  { %s1182_s18 = scalar_lea.vmem %s16_s10, 2816  ;;  %p1187_p4 = scmp.lt.s32.totalorder %s16_s10, %s16_s10 }
   0x8   :  { %p1183_p3 = scmp.ne.s32.totalorder %s16_s10, %s1182_s18  ;;  %p1188_p5 = scmp.lt.s32.totalorder %s1182_s18, %s1182_s18 }
   0xa   :  { %p1189_p6 = por %p1188_p5, %p1187_p4 }
   0xc   :  { %p1190_p7 = pnand %p1189_p6, %p1183_p3 }
   0xe   :  { %1193 = shalt.err (!%p1190_p7)
}
   0xf   :  { %s1197_s19 = smov 128   ;;  %s1198_s20 = smov 8  }
  0x10   :  { %21 = dma.hbm_to_vmem [thread:$0]  %s1538_s1, 2816, %s16_s10, [#allocation3], %s1197_s19, %s1197_s19, %s1198_s20  }
  0x11   :  { %1194 = dma.done.wait [#allocation3], 2816  }
  0x12   :  { %1195 = vsyncadd [#allocation3], 4294964480  ;;  %v1199_v0 = vmov 2   ;;  %v1200_v1 = vmov 0   ;;  %v25_v2 = vld [vmem:[%s1537_s0] sm:$0xff]  ;;  %v181_v4 = vld [vmem:[#allocation2 + $0x8] sm:$0xff]  ;;  %v29_v47 = vlaneseq }
  0x13   :  { %1156 = vset.pattern.permute.xlu1 %v1199_v0  ;;  %1155 = vset.pattern.permute.xlu0 %v1200_v1  ;;  %v180_v3 = vld [vmem:[#allocation2] sm:$0xff]  ;;  %v1242_v5 = vld [vmem:[%s1537_s0 + $0x8] sm:$0x1f]  ;;  %v1201_v6 = vmov 0.0|0.0   ;;  %v1249_v8 = vld [vmem:[%s1537_s0 + $0x10] sm:$0xff]  ;;  %v1202_v12 = vmov 1  }
  0x14   :  { %81 = vperm.xlu1 %1156, %v25_v2   ;;  %33 = vperm.xlu0 %1155, %v25_v2   ;;  %v1090_v7 = vpack.c.bf16 %v181_v4, %v180_v3  ;;  %v182_v9 = vld [vmem:[#allocation2 + $0x10] sm:$0xff]  ;;  %v183_v10 = vld [vmem:[#allocation2 + $0x18] sm:$0xff]  ;;  %v184_v14 = vld [vmem:[#allocation2 + $0x20] sm:$0xff]  ;;  %v1203_v22 = vmov 4   ;;  %v1204_v24 = vmov 3   ;;  %v1304_v50 = vand.u32 127, %v29_v47 }
  0x15   :  { %1089 = vmatprep.subr.bf16.mxu0 %v1201_v6  ;;  %1122 = vmatprep.subr.bf16.mxu1 %v1201_v6  ;;  %v1093_v11 = vpack.c.bf16 %v183_v10, %v182_v9  ;;  %v1261_v13 = vld [vmem:[%s1537_s0 + $0x18] sm:$0x1f]  ;;  %v185_v15 = vld [vmem:[#allocation2 + $0x28] sm:$0xff]  ;;  %v186_v17 = vld [vmem:[#allocation2 + $0x30] sm:$0xff]  ;;  %v1205_v56 = vmov 1966171168  }
  0x16   :  { %1091 = vmatpush1.bf16.msra.mxu0 %v1090_v7  ;;  %1133 = vmatpush1.bf16.msra.mxu1 %v1090_v7  ;;  %v1096_v16 = vpack.c.bf16 %v185_v15, %v184_v14  ;;  %v187_v18 = vld [vmem:[#allocation2 + $0x38] sm:$0xff]  ;;  %v188_v20 = vld [vmem:[#allocation2 + $0x40] sm:$0xff]  ;;  %v189_v21 = vld [vmem:[#allocation2 + $0x48] sm:$0xff]  ;;  %v1311_v53 = vadd.s32 128, %v1304_v50  ;;  %v213_v57 = vunpack.c.l.s4 %v1205_v56  ;;  %v216_v60 = vshrl.u32 %v29_v47, 7 }
  0x17   :  { %1092 = vmatprep.subr.bf16.mxu0 %v1201_v6  ;;  %1123 = vmatprep.subr.bf16.mxu1 %v1201_v6  ;;  %v1099_v19 = vpack.c.bf16 %v187_v18, %v186_v17  ;;  %v1102_v23 = vpack.c.bf16 %v189_v21, %v188_v20  ;;  %v190_v25 = vld [vmem:[#allocation2 + $0x50] sm:$0xff]  ;;  %v191_v26 = vld [vmem:[#allocation2 + $0x58] sm:$0xff]  ;;  %v192_v28 = vld [vmem:[#allocation2 + $0x60] sm:$0xff]  ;;  %v1206_v63 = vmov 0.0  }
  0x18   :  { %1157 = vset.pattern.permute.xlu1 %v1200_v1  ;;  %36 = vperm.xlu0 %1155, %v1242_v5   ;;  %v1105_v27 = vpack.c.bf16 %v191_v26, %v190_v25  ;;  %v193_v29 = vld [vmem:[#allocation2 + $0x68] sm:$0xff]  ;;  %v194_v31 = vld [vmem:[#allocation2 + $0x70] sm:$0xff]  ;;  %v195_v32 = vld [vmem:[#allocation2 + $0x78] sm:$0xff]  ;;  %v214_v59 = vunpack.c.0.s8 %v213_v57 }
  0x19   :  { %39 = vperm.xlu1 %1157, %v1249_v8   ;;  %v1108_v30 = vpack.c.bf16 %v193_v29, %v192_v28  ;;  %v1111_v33 = vpack.c.bf16 %v195_v32, %v194_v31  ;;  %v196_v34 = vld [vmem:[#allocation2 + $0x80] sm:$0xff]  ;;  %v197_v35 = vld [vmem:[#allocation2 + $0x88] sm:$0xff]  ;;  %v198_v36 = vld [vmem:[#allocation2 + $0x90] sm:$0xff] }
  0x1a   :  { %1094 = vmatpush1.bf16.msra.mxu0 %v1093_v11  ;;  %1134 = vmatpush1.bf16.msra.mxu1 %v1093_v11  ;;  %v1114_v37 = vpack.c.bf16 %v197_v35, %v196_v34  ;;  %v199_v38 = vld [vmem:[#allocation2 + $0x98] sm:$0xff]  ;;  %v200_v40 = vld [vmem:[#allocation2 + $0xa0] sm:$0xff]  ;;  %v201_v41 = vld [vmem:[#allocation2 + $0xa8] sm:$0xff]  ;;  %v1325_v62 = vsub.s32 %v214_v59, %v216_v60 }
  0x1b   :  { %1095 = vmatprep.subr.bf16.mxu0 %v1201_v6  ;;  %1124 = vmatprep.subr.bf16.mxu1 %v1201_v6  ;;  %v1117_v39 = vpack.c.bf16 %v199_v38, %v198_v36  ;;  %v1120_v42 = vpack.c.bf16 %v201_v41, %v200_v40 }
  0x1c   :  { %1161 = vset.pattern.permute.xlu0 %v1202_v12 }
  0x1d   :  { %1158 = vset.pattern.permute.xlu1 %v1202_v12  ;;  %53 = vperm.xlu0 %1161, %v25_v2  }
  0x1e   :  { %59 = vperm.xlu1 %1158, %v1249_v8   ;;  %1097 = vmatpush1.bf16.msra.mxu0 %v1096_v16 }
  0x1f   :  { %1098 = vmatprep.subr.bf16.mxu0 %v1201_v6  ;;  %1135 = vmatpush1.bf16.msra.mxu1 %v1096_v16 }
  0x20   :  { %1125 = vmatprep.subr.bf16.mxu1 %v1201_v6 }
  0x21   :  { %62 = vperm.xlu0 %1161, %v1261_v13  }
  0x22   :  { %1159 = vset.pattern.permute.xlu1 %v1199_v0  ;;  %1100 = vmatpush1.bf16.msra.mxu0 %v1099_v19 }
  0x23   :  { %87 = vperm.xlu1 %1159, %v1249_v8   ;;  %1101 = vmatprep.subr.bf16.mxu0 %v1201_v6 }
  0x24   :  { %1136 = vmatpush1.bf16.msra.mxu1 %v1099_v19 }
  0x25   :  { %1166 = vset.pattern.permute.xlu0 %v1199_v0  ;;  %1126 = vmatprep.subr.bf16.mxu1 %v1201_v6 }
  0x26   :  { %90 = vperm.xlu0 %1166, %v1261_v13   ;;  %1103 = vmatpush1.bf16.msra.mxu0 %v1102_v23 }
  0x27   :  { %1160 = vset.pattern.permute.xlu1 %v1203_v22  ;;  %1104 = vmatprep.subr.bf16.mxu0 %v1201_v6 }
  0x28   :  { %137 = vperm.xlu1 %1160, %v25_v2   ;;  %1137 = vmatpush1.bf16.msra.mxu1 %v1102_v23 }
  0x29   :  { %1127 = vmatprep.subr.bf16.mxu1 %v1201_v6 }
  0x2a   :  { %1167 = vset.pattern.permute.xlu0 %v1204_v24  ;;  %1106 = vmatpush1.bf16.msra.mxu0 %v1105_v27 }
  0x2b   :  { %109 = vperm.xlu0 %1167, %v25_v2   ;;  %1107 = vmatprep.subr.bf16.mxu0 %v1201_v6 }
  0x2c   :  { %1162 = vset.pattern.permute.xlu1 %v1200_v1  ;;  %1138 = vmatpush1.bf16.msra.mxu1 %v1105_v27 }
  0x2d   :  { %42 = vperm.xlu1 %1162, %v1261_v13   ;;  %1128 = vmatprep.subr.bf16.mxu1 %v1201_v6 }
  0x2e   :  { %1109 = vmatpush1.bf16.msra.mxu0 %v1108_v30 }
  0x2f   :  { %118 = vperm.xlu0 %1167, %v1261_v13   ;;  %1110 = vmatprep.subr.bf16.mxu0 %v1201_v6 }
  0x30   :  { %1139 = vmatpush1.bf16.msra.mxu1 %v1108_v30 }
  0x31   :  { %1163 = vset.pattern.permute.xlu1 %v1202_v12  ;;  %1129 = vmatprep.subr.bf16.mxu1 %v1201_v6 }
  0x32   :  { %56 = vperm.xlu1 %1163, %v1242_v5   ;;  %1112 = vmatpush1.bf16.msra.mxu0 %v1111_v33 }
  0x33   :  { %1171 = vset.pattern.permute.xlu0 %v1203_v22  ;;  %1113 = vmatprep.subr.bf16.mxu0 %v1201_v6 }
  0x34   :  { %1140 = vmatpush1.bf16.msra.mxu1 %v1111_v33 }
  0x35   :  { %1130 = vmatprep.subr.bf16.mxu1 %v1201_v6 }
  0x36   :  { %1164 = vset.pattern.permute.xlu1 %v1204_v24  ;;  %1115 = vmatpush1.bf16.msra.mxu0 %v1114_v37 }
  0x37   :  { %115 = vperm.xlu1 %1164, %v1249_v8   ;;  %1116 = vmatprep.subr.bf16.mxu0 %v1201_v6 }
  0x38   :  { %1141 = vmatpush1.bf16.msra.mxu1 %v1114_v37 }
  0x39   :  { %1131 = vmatprep.subr.bf16.mxu1 %v1201_v6 }
  0x3a   :  { %1118 = vmatpush1.bf16.msra.mxu0 %v1117_v39 }
  0x3b   :  { %1165 = vset.pattern.permute.xlu1 %v1199_v0  ;;  %1119 = vmatprep.subr.bf16.mxu0 %v1201_v6 }
  0x3c   :  { %84 = vperm.xlu1 %1165, %v1242_v5   ;;  %1142 = vmatpush1.bf16.msra.mxu1 %v1117_v39 }
  0x3d   :  { %1132 = vmatprep.subr.bf16.mxu1 %v1201_v6 }
  0x3e   :  { %1121 = vmatpush1.bf16.msra.mxu0 %v1120_v42 }
  0x40   :  { %1168 = vset.pattern.permute.xlu1 %v1203_v22  ;;  %1143 = vmatpush1.bf16.msra.mxu1 %v1120_v42 }
  0x41   :  { %143 = vperm.xlu1 %1168, %v1249_v8  }
  0x45   :  { %1169 = vset.pattern.permute.xlu1 %v1204_v24 }
  0x46   :  { %112 = vperm.xlu1 %1169, %v1242_v5  }
  0x4a   :  { %1170 = vset.pattern.permute.xlu1 %v1203_v22 }
  0x4b   :  { %140 = vperm.xlu1 %1170, %v1242_v5  }
  0x4f   :  { %146 = vperm.xlu1 %1170, %v1261_v13  }
  0x93   :  { %v82_v43 = vpop.permute.xlu1 %81  ;;  %v34_v44 = vpop.permute.xlu0 %33 }
  0x94   :  { %vm44_vm0 = vcmp.eq.s32.totalorder %v34_v44, %v1304_v50  ;;  %vm45_vm2 = vcmp.eq.s32.totalorder %v34_v44, %v1311_v53  ;;  %vm92_vm6 = vcmp.eq.s32.totalorder %v82_v43, %v1304_v50  ;;  %vm93_vm7 = vcmp.eq.s32.totalorder %v82_v43, %v1311_v53 }
  0x97   :  { %v1300_v45 = vpop.permute.xlu0 %36 }
  0x98   :  { %v1302_v46 = vpop.permute.xlu1 %39 }
  0x9c   :  { %v54_v48 = vpop.permute.xlu0 %53 }
  0x9d   :  { %v60_v49 = vpop.permute.xlu1 %59  ;;  %vm64_vm1 = vcmp.eq.s32.totalorder %v54_v48, %v1304_v50  ;;  %vm65_vm3 = vcmp.eq.s32.totalorder %v54_v48, %v1311_v53 }
  0x9e   :  { %vm72_vm4 = vmor %vm44_vm0, %vm64_vm1 }
  0x9f   :  { %vm73_vm5 = vmor %vm45_vm2, %vm65_vm3  ;;  %vm68_vm2 = vcmp.eq.s32.totalorder %v60_v49, %v1304_v50  ;;  %vm48_vm3 = vcmp.eq.s32.totalorder %v1302_v46, %v1304_v50 }
  0xa0   :  { %v1306_v51 = vpop.permute.xlu0 %62  ;;  %vm100_vm8 = vmor %vm72_vm4, %vm92_vm6  ;;  %vm69_vm4 = vcmp.eq.s32.totalorder %v60_v49, %v1311_v53  ;;  %vm49_vm6 = vcmp.eq.s32.totalorder %v1302_v46, %v1311_v53 }
  0xa1   :  { %vm101_vm9 = vmor %vm73_vm5, %vm93_vm7 }
  0xa2   :  { %v1308_v52 = vpop.permute.xlu1 %87  ;;  %vm76_vm7 = vmor %vm48_vm3, %vm68_vm2 }
  0xa3   :  { %vm96_vm5 = vcmp.eq.s32.totalorder %v1308_v52, %v1304_v50 }
  0xa5   :  { %v1317_v54 = vpop.permute.xlu0 %90 }
  0xa7   :  { %v138_v55 = vpop.permute.xlu1 %137 }
  0xa8   :  { %vm148_vm13 = vcmp.eq.s32.totalorder %v138_v55, %v1304_v50  ;;  %vm149_vm15 = vcmp.eq.s32.totalorder %v138_v55, %v1311_v53 }
  0xaa   :  { %v110_v58 = vpop.permute.xlu0 %109 }
  0xab   :  { %vm120_vm10 = vcmp.eq.s32.totalorder %v110_v58, %v1304_v50  ;;  %vm121_vm11 = vcmp.eq.s32.totalorder %v110_v58, %v1311_v53 }
  0xac   :  { %vm128_vm12 = vmor %vm100_vm8, %vm120_vm10  ;;  %v43_v61 = vpop.permute.xlu1 %42  ;;  %vm97_vm8 = vcmp.eq.s32.totalorder %v1308_v52, %v1311_v53 }
  0xad   :  { %vm129_vm14 = vmor %vm101_vm9, %vm121_vm11  ;;  %vm70_vm9 = vcmp.eq.s32.totalorder %v1306_v51, %v1304_v50  ;;  %vm50_vm10 = vcmp.eq.s32.totalorder %v43_v61, %v1304_v50 }
  0xae   :  { %vm156_vm0 = vmor %vm128_vm12, %vm148_vm13  ;;  %vm71_vm13 = vcmp.eq.s32.totalorder %v1306_v51, %v1311_v53  ;;  %v119_v36 = vpop.permute.xlu0 %118 }
  0xaf   :  { %vm157_vm1 = vmor %vm129_vm14, %vm149_vm15  ;;  %v1071_v0 = vsel %vm156_vm0, 1.0, %v1206_v63  ;;  %vm51_vm14 = vcmp.eq.s32.totalorder %v43_v61, %v1311_v53 }
  0xb0   :  { %v1072_v1 = vsel %vm157_vm1, 1.0, %v1206_v63  ;;  %vm77_vm11 = vmor %vm49_vm6, %vm69_vm4  ;;  %vm98_vm4 = vcmp.eq.s32.totalorder %v1317_v54, %v1304_v50  ;;  %vm1540_vm6 = vcmask 392192  }
  0xb1   :  { %v210_v2 = vcombine.low %v1071_v0, %v1072_v1  ;;  %v211_v3 = vcombine.high %v1071_v0, %v1072_v1  ;;  %v1329_v4 = vpop.permute.xlu1 %56  ;;  %vm1357_vm12 = vmor %vm76_vm7, %vm96_vm5 }
  0xb2   :  { %vm1365_vm0 = vmor %vm77_vm11, %vm97_vm8  ;;  %vm99_vm11 = vcmp.eq.s32.totalorder %v1317_v54, %v1311_v53 }
  0xb3   :  { %v218_v5 = vrot.slane %v210_v2, %v1325_v62  ;;  %v225_v6 = vrot.slane %v211_v3, %v1325_v62  ;;  %vm1374_vm1 = vmor %vm50_vm10, %vm70_vm9 }
  0xb4   :  { %vm1379_vm3 = vmor %vm51_vm14, %vm71_vm13 }
  0xb5   :  { %v226_v7 = vcombine.high %v218_v5, %v218_v5  ;;  %v227_v8 = vcombine.high %v225_v6, %v225_v6  ;;  %v234_v10 = vrot.slane %v218_v5, %v1325_v62  ;;  %v241_v11 = vrot.slane %v225_v6, %v1325_v62  ;;  %vm106_vm14 = vmor %vm1374_vm1, %vm98_vm4 }
  0xb6   :  { %v116_v9 = vpop.permute.xlu1 %115  ;;  %vm1419_vm1 = vmor %vm1379_vm3, %vm99_vm11 }
  0xb7   :  { %v248_v12 = vrot.slane %v226_v7, %v1325_v62  ;;  %v255_v13 = vrot.slane %v227_v8, %v1325_v62  ;;  %vm124_vm15 = vcmp.eq.s32.totalorder %v116_v9, %v1304_v50  ;;  %vm125_vm2 = vcmp.eq.s32.totalorder %v116_v9, %v1311_v53 }
  0xb8   :  { %vm132_vm5 = vmor %vm1357_vm12, %vm124_vm15  ;;  %vm46_vm12 = vcmp.eq.s32.totalorder %v1300_v45, %v1304_v50  ;;  %vm126_vm15 = vcmp.eq.s32.totalorder %v119_v36, %v1304_v50 }
  0xb9   :  { %v390_v14 = vcombine.low %v234_v10, %v248_v12  ;;  %v1079_v15 = vcombine.high %v234_v10, %v248_v12  ;;  %v392_v16 = vcombine.low %v241_v11, %v255_v13  ;;  %v1080_v17 = vcombine.high %v241_v11, %v255_v13  ;;  %vm133_vm7 = vmor %vm1365_vm0, %vm125_vm2 }
  0xba   :  { %vm66_vm0 = vcmp.eq.s32.totalorder %v1329_v4, %v1304_v50  ;;  %vm47_vm2 = vcmp.eq.s32.totalorder %v1300_v45, %v1311_v53 }
  0xbb   :  { %v85_v18 = vpop.permute.xlu1 %84  ;;  %v400_v19 = vrot.slane %v390_v14, %v1325_v62  ;;  %v407_v20 = vrot.slane %v1079_v15, %v1325_v62  ;;  %v414_v21 = vrot.slane %v392_v16, %v1325_v62  ;;  %v421_v22 = vrot.slane %v1080_v17, %v1325_v62 }
  0xbc   :  { %vm94_vm4 = vcmp.eq.s32.totalorder %v85_v18, %v1304_v50 }
  0xbd   :  { %v423_v25 = vcombine.high %v400_v19, %v407_v20  ;;  %v425_v26 = vcombine.high %v414_v21, %v421_v22  ;;  %v422_v27 = vcombine.low %v400_v19, %v407_v20  ;;  %v424_v28 = vcombine.low %v414_v21, %v421_v22 }
  0xbf   :  { %v439_v31 = vrot.slane %v423_v25, %v1325_v62  ;;  %v453_v32 = vrot.slane %v425_v26, %v1325_v62  ;;  %v432_v33 = vrot.slane %v422_v27, %v1325_v62  ;;  %v446_v34 = vrot.slane %v424_v28, %v1325_v62 }
  0xc0   :  { %v144_v35 = vpop.permute.xlu1 %143 }
  0xc1   :  { %vm152_vm8 = vcmp.eq.s32.totalorder %v144_v35, %v1304_v50  ;;  %vm153_vm9 = vcmp.eq.s32.totalorder %v144_v35, %v1311_v53  ;;  %v455_v37 = vcombine.low %v439_v31, %v453_v32  ;;  %v454_v38 = vcombine.low %v432_v33, %v446_v34 }
  0xc2   :  { %vm160_vm10 = vmor %vm132_vm5, %vm152_vm8  ;;  %vm67_vm5 = vcmp.eq.s32.totalorder %v1329_v4, %v1311_v53 }
  0xc3   :  { %vm161_vm13 = vmor %vm133_vm7, %vm153_vm9  ;;  %v1075_v39 = vsel %vm160_vm10, 1.0, %v1206_v63  ;;  %1082 = vmatprep.mubr.msk.f32.mxu0 %vm1540_vm6, %v455_v37  ;;  %vm95_vm9 = vcmp.eq.s32.totalorder %v85_v18, %v1311_v53 }
  0xc4   :  { %v1076_v40 = vsel %vm161_vm13, 1.0, %v1206_v63  ;;  %689 = vmatmul.mubr.f32.vlgmr.msra.gmra.mrb[0].mxu0 %v454_v38  ;;  %vm1424_vm7 = vmor %vm106_vm14, %vm126_vm15 }
  0xc5   :  { %v300_v41 = vcombine.low %v1075_v39, %v1076_v40  ;;  %v301_v42 = vcombine.high %v1075_v39, %v1076_v40  ;;  %v113_v43 = vpop.permute.xlu1 %112  ;;  %vm74_vm8 = vmor %vm46_vm12, %vm66_vm0  ;;  %vm127_vm12 = vcmp.eq.s32.totalorder %v119_v36, %v1311_v53 }
  0xc6   :  { %vm75_vm10 = vmor %vm47_vm2, %vm67_vm5  ;;  %vm122_vm13 = vcmp.eq.s32.totalorder %v113_v43, %v1304_v50  ;;  %vm123_vm3 = vcmp.eq.s32.totalorder %v113_v43, %v1311_v53 }
  0xc7   :  { %v308_v45 = vrot.slane %v300_v41, %v1325_v62  ;;  %vm102_vm6 = vmor %vm74_vm8, %vm94_vm4  ;;  %v315_v47 = vrot.slane %v301_v42, %v1325_v62 }
  0xc8   :  { %vm103_vm11 = vmor %vm75_vm10, %vm95_vm9 }
  0xc9   :  { %v316_v48 = vcombine.high %v308_v45, %v308_v45  ;;  %v324_v51 = vrot.slane %v308_v45, %v1325_v62  ;;  %vm130_vm14 = vmor %vm102_vm6, %vm122_vm13  ;;  %v317_v54 = vcombine.high %v315_v47, %v315_v47  ;;  %v331_v55 = vrot.slane %v315_v47, %v1325_v62 }
  0xca   :  { %v141_v49 = vpop.permute.xlu1 %140  ;;  %vm131_vm15 = vmor %vm103_vm11, %vm123_vm3 }
  0xcb   :  { %v338_v52 = vrot.slane %v316_v48, %v1325_v62  ;;  %vm150_vm0 = vcmp.eq.s32.totalorder %v141_v49, %v1304_v50  ;;  %vm151_vm2 = vcmp.eq.s32.totalorder %v141_v49, %v1311_v53  ;;  %vm135_vm6 = vmor %vm1419_vm1, %vm127_vm12  ;;  %v346_v58 = vcombine.high %v324_v51, %v324_v51 }
  0xcc   :  { %vm158_vm5 = vmor %vm130_vm14, %vm150_vm0  ;;  %v345_v1 = vrot.slane %v317_v54, %v1325_v62  ;;  %v347_v2 = vcombine.high %v331_v55, %v331_v55  ;;  %vm1553_vm1 = vcmask 392192  }
  0xcd   :  { %vm159_vm4 = vmor %vm131_vm15, %vm151_vm2  ;;  %v1073_v56 = vsel %vm158_vm5, 1.0, %v1206_v63  ;;  %v348_v0 = vcombine.high %v338_v52, %v338_v52  ;;  %v459_v6 = vcombine.low %v338_v52, %v346_v58 }
  0xce   :  { %v147_v57 = vpop.permute.xlu1 %146  ;;  %v1074_v59 = vsel %vm159_vm4, 1.0, %v1206_v63  ;;  %v523_v12 = vcombine.low %v345_v1, %v347_v2  ;;  %v349_v16 = vcombine.high %v345_v1, %v345_v1  ;;  %vm1555_vm3 = vmmov %vm1553_vm1 }
  0xcf   :  { %vm154_vm8 = vcmp.eq.s32.totalorder %v147_v57, %v1304_v50  ;;  %vm155_vm9 = vcmp.eq.s32.totalorder %v147_v57, %v1311_v53  ;;  %v260_v60 = vcombine.low %v1073_v56, %v1074_v59  ;;  %v261_v61 = vcombine.high %v1073_v56, %v1074_v59 }
  0xd0   :  { %vm162_vm10 = vmor %vm1424_vm7, %vm154_vm8  ;;  %v522_v10 = vcombine.low %v348_v0, %v331_v55  ;;  %v487_v19 = vrot.slane %v459_v6, %v1325_v62  ;;  %v539_v27 = vrot.slane %v523_v12, %v1325_v62 }
  0xd1   :  { %vm163_vm13 = vmor %vm135_vm6, %vm155_vm9  ;;  %v1077_v3 = vsel %vm162_vm10, 1.0, %v1206_v63  ;;  %v268_v4 = vrot.slane %v260_v60, %v1325_v62  ;;  %v275_v5 = vrot.slane %v261_v61, %v1325_v62 }
  0xd2   :  { %v1078_v50 = vsel %vm163_vm13, 1.0, %v1206_v63  ;;  %v532_v23 = vrot.slane %v522_v10, %v1325_v62  ;;  %vm1554_vm7 = vmmov %vm1553_vm1 }
  0xd3   :  { %v350_v53 = vcombine.low %v1077_v3, %v1078_v50  ;;  %v351_v7 = vcombine.high %v1077_v3, %v1078_v50  ;;  %v276_v8 = vcombine.high %v268_v4, %v268_v4  ;;  %v290_v9 = vrot.slane %v275_v5, %v1325_v62 }
  0xd4   :  { %v283_v13 = vrot.slane %v268_v4, %v1325_v62  ;;  %v555_v37 = vcombine.high %v532_v23, %v539_v27  ;;  %v554_v41 = vcombine.low %v532_v23, %v539_v27 }
  0xd5   :  { %v358_v11 = vrot.slane %v350_v53, %v1325_v62  ;;  %v297_v14 = vrot.slane %v276_v8, %v1325_v62  ;;  %v458_v15 = vcombine.low %v290_v9, %v324_v51  ;;  %v365_v17 = vrot.slane %v351_v7, %v1325_v62 }
  0xd6   :  { %v571_v52 = vrot.slane %v555_v37, %v1325_v62  ;;  %v564_v55 = vrot.slane %v554_v41, %v1325_v62 }
  0xd7   :  { %v366_v18 = vcombine.high %v358_v11, %v358_v11  ;;  %v373_v63 = vrot.slane %v358_v11, %v1325_v62  ;;  %v456_v20 = vcombine.low %v283_v13, %v297_v14  ;;  %v1081_v21 = vcombine.high %v283_v13, %v297_v14 }
  0xd8   :  { %v480_v22 = vrot.slane %v458_v15, %v1325_v62  ;;  %v380_v32 = vrot.slane %v365_v17, %v1325_v62 }
  0xd9   :  { %v387_v24 = vrot.slane %v366_v18, %v1325_v62  ;;  %v388_v25 = vcombine.high %v373_v63, %v373_v63  ;;  %v524_v26 = vcombine.low %v349_v16, %v373_v63  ;;  %v466_v28 = vrot.slane %v456_v20, %v1325_v62 }
  0xda   :  { %v473_v29 = vrot.slane %v1081_v21, %v1325_v62  ;;  %v491_v30 = vcombine.high %v480_v22, %v487_v19  ;;  %v490_v31 = vcombine.low %v480_v22, %v487_v19 }
  0xdb   :  { %v389_v33 = vcombine.high %v387_v24, %v387_v24  ;;  %v525_v34 = vcombine.low %v387_v24, %v388_v25  ;;  %v546_v39 = vrot.slane %v524_v26, %v1325_v62 }
  0xdc   :  { %v489_v35 = vcombine.high %v466_v28, %v473_v29  ;;  %v488_v36 = vcombine.low %v466_v28, %v473_v29  ;;  %v519_v43 = vrot.slane %v491_v30, %v1325_v62  ;;  %v512_v46 = vrot.slane %v490_v31, %v1325_v62 }
  0xdd   :  { %v588_v38 = vcombine.low %v389_v33, %v380_v32  ;;  %v553_v40 = vrot.slane %v525_v34, %v1325_v62 }
  0xde   :  { %v505_v42 = vrot.slane %v489_v35, %v1325_v62  ;;  %v498_v44 = vrot.slane %v488_v36, %v1325_v62 }
  0xdf   :  { %v557_v45 = vcombine.high %v546_v39, %v553_v40  ;;  %v556_v47 = vcombine.low %v546_v39, %v553_v40  ;;  %v595_v48 = vrot.slane %v588_v38, %v1325_v62 }
  0xe0   :  { %v521_v49 = vcombine.low %v505_v42, %v519_v43  ;;  %v520_v51 = vcombine.low %v498_v44, %v512_v46 }
  0xe1   :  { %v585_v54 = vrot.slane %v557_v45, %v1325_v62  ;;  %v578_v56 = vrot.slane %v556_v47, %v1325_v62  ;;  %v596_v57 = vcombine.high %v595_v48, %v595_v48  ;;  %v603_v61 = vrot.slane %v595_v48, %v1325_v62 }
  0xe2   :  { %1083 = vmatprep.mubr.msk.f32.mxu0 %vm1553_vm1, %v521_v49 }
  0xe3   :  { %694 = vmatmul.mubr.f32.gmra.mrb[2].mxu0 %v520_v51  ;;  %v587_v58 = vcombine.low %v571_v52, %v585_v54  ;;  %v586_v59 = vcombine.low %v564_v55, %v578_v56  ;;  %v610_v60 = vrot.slane %v596_v57, %v1325_v62 }
  0xe5   :  { %1084 = vmatprep.mubr.msk.f32.mxu1 %vm1554_vm7, %v587_v58 }
  0xe6   :  { %699 = vmatmul.mubr.f32.vlgmr.msra.gmra.mrb[0].mxu1 %v586_v59 }
  0xe7   :  { %1085 = vmatprep.mubr.msk.f32.mxu1 %vm1555_vm3, %v610_v60 }
  0xea   :  { %704 = vmatmul.mubr.f32.gmra.mrb[2].mxu1 %v603_v61 }
 0x197   :  { %v690_v0 = vpop.f32.mrb[0].mxu0 }
 0x198   :  { %v713_v1 = vcombine.high %v690_v0, %v690_v0  ;;  %v720_v2 = vrot.slane %v690_v0, %v1325_v62  ;;  %v692_v3 = vpop.f32.mrb[1].mxu0 }
 0x19a   :  { %v727_v4 = vrot.slane %v713_v1, %v1325_v62  ;;  %v728_v5 = vcombine.high %v720_v2, %v720_v2  ;;  %v736_v6 = vrot.slane %v720_v2, %v1325_v62 }
 0x19c   :  { %v729_v50 = vcombine.high %v727_v4, %v727_v4  ;;  %v750_v53 = vrot.slane %v728_v5, %v1325_v62  ;;  %v743_v7 = vrot.slane %v727_v4, %v1325_v62 }
 0x19e   :  { %v757_v8 = vrot.slane %v729_v50, %v1325_v62  ;;  %v882_v9 = vcombine.low %v736_v6, %v750_v53  ;;  %v1086_v10 = vcombine.high %v736_v6, %v750_v53 }
 0x1a0   :  { %v884_v11 = vcombine.low %v743_v7, %v757_v8  ;;  %v1087_v12 = vcombine.high %v743_v7, %v757_v8  ;;  %v892_v13 = vrot.slane %v882_v9, %v1325_v62  ;;  %v899_v14 = vrot.slane %v1086_v10, %v1325_v62 }
 0x1a2   :  { %v906_v15 = vrot.slane %v884_v11, %v1325_v62  ;;  %v913_v16 = vrot.slane %v1087_v12, %v1325_v62  ;;  %v914_v17 = vcombine.low %v892_v13, %v899_v14 }
 0x1a4   :  { %v915_v18 = vcombine.low %v906_v15, %v913_v16  ;;  %v922_v63 = vrot.slane %v914_v17, %v1325_v62 }
 0x1a6   :  { %v929_v19 = vrot.slane %v915_v18, %v1325_v62 }
 0x1a8   :  { %v930_v20 = vcombine.low %v922_v63, %v929_v19 }
 0x1aa   :  { %1062 = vst [vmem:[%s1539_s2] sm:$0xff] %v930_v20 }
 0x1b6   :  { %v695_v21 = vpop.f32.mrb[2].mxu0 }
 0x1b7   :  { %v762_v22 = vcombine.high %v695_v21, %v695_v21  ;;  %v769_v23 = vrot.slane %v695_v21, %v1325_v62  ;;  %v697_v24 = vpop.f32.mrb[3].mxu0 }
 0x1b9   :  { %v776_v25 = vrot.slane %v762_v22, %v1325_v62  ;;  %v777_v26 = vcombine.high %v769_v23, %v769_v23  ;;  %v700_v27 = vpop.f32.mrb[0].mxu1  ;;  %v785_v32 = vrot.slane %v769_v23, %v1325_v62 }
 0x1ba   :  { %v811_v28 = vcombine.high %v700_v27, %v700_v27  ;;  %v818_v29 = vrot.slane %v700_v27, %v1325_v62  ;;  %v702_v30 = vpop.f32.mrb[1].mxu1 }
 0x1bb   :  { %v778_v31 = vcombine.high %v776_v25, %v776_v25  ;;  %v792_v33 = vrot.slane %v776_v25, %v1325_v62  ;;  %v799_v34 = vrot.slane %v777_v26, %v1325_v62 }
 0x1bc   :  { %v825_v35 = vrot.slane %v811_v28, %v1325_v62  ;;  %v826_v36 = vcombine.high %v818_v29, %v818_v29  ;;  %v834_v37 = vrot.slane %v818_v29, %v1325_v62 }
 0x1bd   :  { %v806_v38 = vrot.slane %v778_v31, %v1325_v62  ;;  %v808_v39 = vcombine.high %v792_v33, %v792_v33  ;;  %v931_v40 = vcombine.low %v785_v32, %v799_v34  ;;  %v1088_v41 = vcombine.high %v785_v32, %v799_v34  ;;  %v705_v42 = vpop.f32.mrb[2].mxu1 }
 0x1be   :  { %v953_v43 = vrot.slane %v792_v33, %v1325_v62  ;;  %v827_v44 = vcombine.high %v825_v35, %v825_v35  ;;  %v841_v46 = vrot.slane %v825_v35, %v1325_v62  ;;  %v848_v45 = vrot.slane %v826_v36, %v1325_v62  ;;  %v707_v47 = vpop.f32.mrb[3].mxu1 }
 0x1bf   :  { %v939_v48 = vrot.slane %v931_v40, %v1325_v62  ;;  %v946_v49 = vrot.slane %v1088_v41, %v1325_v62  ;;  %v970_v51 = vcombine.low %v806_v38, %v808_v39  ;;  %v810_v52 = vcombine.high %v806_v38, %v806_v38 }
 0x1c0   :  { %v855_v54 = vrot.slane %v827_v44, %v1325_v62  ;;  %v856_v55 = vcombine.high %v834_v37, %v834_v37  ;;  %v857_v56 = vcombine.high %v841_v46, %v841_v46  ;;  %v858_v58 = vcombine.high %v848_v45, %v848_v45 }
 0x1c1   :  { %v954_v57 = vcombine.low %v939_v48, %v946_v49  ;;  %v971_v59 = vcombine.low %v810_v52, %v834_v37  ;;  %v968_v60 = vrot.slane %v953_v43, %v1325_v62  ;;  %v866_v1 = vrot.slane %v705_v42, %v1325_v62 }
 0x1c2   :  { %v972_v61 = vcombine.low %v848_v45, %v856_v55  ;;  %v859_v0 = vcombine.high %v855_v54, %v855_v54  ;;  %v973_v3 = vcombine.low %v858_v58, %v841_v46  ;;  %v980_v4 = vrot.slane %v970_v51, %v1325_v62 }
 0x1c3   :  { %v961_v2 = vrot.slane %v954_v57, %v1325_v62  ;;  %v987_v5 = vrot.slane %v971_v59, %v1325_v62  ;;  %v1019_v50 = vcombine.low %v855_v54, %v857_v56  ;;  %v867_v6 = vcombine.high %v866_v1, %v866_v1 }
 0x1c4   :  { %v874_v53 = vrot.slane %v866_v1, %v1325_v62  ;;  %v994_v8 = vrot.slane %v972_v61, %v1325_v62  ;;  %v1001_v9 = vrot.slane %v973_v3, %v1325_v62 }
 0x1c5   :  { %v969_v7 = vcombine.low %v961_v2, %v968_v60  ;;  %v1002_v10 = vcombine.low %v980_v4, %v987_v5  ;;  %v881_v11 = vrot.slane %v867_v6, %v1325_v62  ;;  %v1027_v14 = vrot.slane %v1019_v50, %v1325_v62 }
 0x1c6   :  { %v1020_v12 = vcombine.low %v859_v0, %v874_v53  ;;  %v1003_v13 = vcombine.low %v994_v8, %v1001_v9 }
 0x1c7   :  { %1063 = vst [vmem:[%s1539_s2 + $0x8] sm:$0x1f] %v969_v7  ;;  %v1041_v16 = vrot.slane %v881_v11, %v1325_v62  ;;  %v1010_v17 = vrot.slane %v1002_v10, %v1325_v62 }
 0x1c8   :  { %v1034_v15 = vrot.slane %v1020_v12, %v1325_v62  ;;  %v1017_v18 = vrot.slane %v1003_v13, %v1325_v62 }
 0x1c9   :  { %v1056_v21 = vrot.slane %v1041_v16, %v1325_v62 }
 0x1ca   :  { %v1042_v63 = vcombine.low %v1027_v14, %v1034_v15  ;;  %v1018_v19 = vcombine.low %v1010_v17, %v1017_v18 }
 0x1cc   :  { %v1049_v20 = vrot.slane %v1042_v63, %v1325_v62  ;;  %1064 = vst [vmem:[%s1539_s2 + $0x10] sm:$0xff] %v1018_v19 }
 0x1ce   :  { %v1057_v22 = vcombine.low %v1049_v20, %v1056_v21 }
 0x1d0   :  { %1065 = vst [vmem:[%s1539_s2 + $0x18] sm:$0x1f] %v1057_v22 }
 0x1d1   :  { %1070 = vsyncpa [#allocation3], 1 }

</bundles_post_ra>
